<compile_context>
chip_gen: v7x
topology: tpu7x:2x2x1
jax: 0.10.0
libtpu: 0.0.40
codegen_flags: <defaults>
</compile_context>

<pallas_src>
import jax
import jax.numpy as jnp
import numpy as np
from jax import lax
from jax.experimental import pallas as pl
from jax.experimental.pallas import tpu as pltpu


def _word_pool_project_kernel(starts_ref, counts_ref, emb_ref, w_ref, b_ref, out_ref):
    # starts_ref / counts_ref : (Bb, 1, S) int32   per-word subword span [start, start+count)
    # emb_ref                 : (Bb, T, F) bf16    subword embeddings for this batch block
    # w_ref                   : (F, O)     bf16    projection weight (already transposed)
    # b_ref                   : (1, O)     f32     projection bias
    # out_ref                 : (Bb, S, O) f32
    Bb, T, F = emb_ref.shape
    S = starts_ref.shape[2]
    O = w_ref.shape[1]

    starts = starts_ref[...]                      # (Bb, 1, S) int32
    counts = counts_ref[...]                      # (Bb, 1, S) int32

    # Span mask laid out (Bb, T, S): starts/counts broadcast along the sublane
    # (T) axis with no transpose needed.
    t_idx = lax.broadcasted_iota(jnp.int32, (Bb, T, S), 1)
    in_span = (t_idx >= starts) & (t_idx < starts + counts)          # (Bb, T, S)

    counts_f = jnp.maximum(counts, 1).astype(jnp.float32)
    inv = jnp.where(counts > 0,
                    pl.reciprocal(counts_f, approx=True), 0.0)       # (Bb, 1, S) f32

    pool_mat = jnp.where(in_span, inv, 0.0).astype(emb_ref.dtype)    # (Bb, T, S) bf16

    # Mean-pool: contract over T on the MXU, f32 accumulation.
    pooled = jnp.einsum("bts,btf->bsf", pool_mat, emb_ref[...],
                        preferred_element_type=jnp.float32)          # (Bb, S, F) f32

    # Single big projection matmul: (Bb*S, F) @ (F, O).
    flat = pooled.reshape(Bb * S, F).astype(w_ref.dtype)
    out = jnp.dot(flat, w_ref[...], preferred_element_type=jnp.float32) + b_ref[...]
    out_ref[...] = out.reshape(Bb, S, O).astype(out_ref.dtype)


def _pick_block_batch(B, T, F, S, O, emb_bytes=2, budget_bytes=48 << 20):
    """Largest divisor of B whose per-step blocks fit a conservative VMEM budget.

    Budget is sized for v7x (64 MiB physical VMEM) so the same choice is safe
    on v5e/v6e (128 MiB)."""
    divisors = [d for d in range(1, B + 1) if B % d == 0]
    bb = 1
    for d in divisors:
        need = (2 * d * T * F * emb_bytes          # double-buffered emb block (bf16)
                + 2 * d * S * O * 4                # double-buffered f32 out block
                + 2 * 2 * d * S * 4                # starts + counts blocks
                + 2 * F * O * emb_bytes            # weight (double-buffered)
                + 2 * O * 4)                       # bias
        if need <= budget_bytes:
            bb = d
    # Keep >= 2 grid steps when cheap, so v7x's two TensorCores both get work.
    if bb == B and B % 2 == 0 and B > 1:
        bb = B // 2
    return bb


def pretrained_word_embedding_forward(
    sentence_lengths,       # (B,)      int32   number of words per sentence
    embedded_sentences,     # (B, T, F) float   per-subword hidden states
    word_offsets,           # (B, S)    int32   #subwords per word (0 for padding)
    proj_w,                 # (O, F)    float   nn.Linear weight
    proj_b,                 # (O,)      float   nn.Linear bias
    pos_extraction_mode="avg",
):
    B, T, F = embedded_sentences.shape
    S = word_offsets.shape[1]
    O = proj_w.shape[0]

    # ---- glue: per-word subword span (start, count); index 0 is CLS ----
    cum = jnp.cumsum(word_offsets, axis=1)
    span_start = 1 + cum - word_offsets                               # (B, S)
    word_pos = jnp.arange(S)[None, :]
    valid = word_pos < sentence_lengths[:, None]

    if pos_extraction_mode == "avg":
        starts = span_start
        counts = word_offsets
    elif pos_extraction_mode == "left":
        starts = span_start
        counts = jnp.ones_like(word_offsets)
    elif pos_extraction_mode == "right":
        starts = span_start + word_offsets - 1
        counts = jnp.ones_like(word_offsets)
    else:
        raise ValueError(pos_extraction_mode)

    counts = jnp.where(valid & (word_offsets > 0), counts, 0).astype(jnp.int32)
    starts = jnp.where(valid & (word_offsets > 0), starts, 0).astype(jnp.int32)

    # Lane-dense metadata layout: (B, 1, S) so the word axis sits on lanes.
    starts = starts.reshape(B, 1, S)
    counts = counts.reshape(B, 1, S)

    emb_bf16 = embedded_sentences.astype(jnp.bfloat16)
    w_t = proj_w.T.astype(jnp.bfloat16)                 # (F, O)
    bias = proj_b.reshape(1, O).astype(jnp.float32)

    Bb = _pick_block_batch(B, T, F, S, O, emb_bytes=2)
    grid = (B // Bb,)

    # Note: on v7x one could additionally mark the constant weight/bias specs
    # with pipeline_mode=pl.Buffered(1) to skip double-buffering them; omitted
    # here for portability across jax versions.
    out = pl.pallas_call(
        _word_pool_project_kernel,
        out_shape=jax.ShapeDtypeStruct((B, S, O), jnp.float32),
        grid_spec=pltpu.PrefetchScalarGridSpec(
            num_scalar_prefetch=0,
            grid=grid,
            in_specs=[
                pl.BlockSpec((Bb, 1, S), lambda g: (g, 0, 0)),   # starts
                pl.BlockSpec((Bb, 1, S), lambda g: (g, 0, 0)),   # counts
                pl.BlockSpec((Bb, T, F), lambda g: (g, 0, 0)),   # embeddings (bf16)
                pl.BlockSpec((F, O), lambda g: (0, 0)),          # weight (bf16)
                pl.BlockSpec((1, O), lambda g: (0, 0)),          # bias (f32)
            ],
            out_specs=pl.BlockSpec((Bb, S, O), lambda g: (g, 0, 0)),
        ),
        compiler_params=pltpu.CompilerParams(
            dimension_semantics=("parallel",),
            vmem_limit_bytes=64 * 1024 * 1024,
        ),
    )(starts, counts, emb_bf16, w_t, bias)
    return out


def _reference(sentence_lengths, embedded_sentences, word_offsets, proj_w, proj_b,
               mode="avg"):
    emb = np.asarray(embedded_sentences, dtype=np.float64)
    offs = np.asarray(word_offsets)
    lens = np.asarray(sentence_lengths)
    B, T, F = emb.shape
    S = offs.shape[1]
    pooled = np.zeros((B, S, F), dtype=np.float64)
    for i in range(B):
        i_bert = 1
        for w in range(int(lens[i])):
            off = int(offs[i, w])
            if mode == "avg":
                pooled[i, w] = emb[i, i_bert:i_bert + off].mean(axis=0)
            elif mode == "left":
                pooled[i, w] = emb[i, i_bert]
            else:  # right
                pooled[i, w] = emb[i, i_bert + off - 1]
            i_bert += off
    return pooled @ np.asarray(proj_w, dtype=np.float64).T + np.asarray(proj_b, dtype=np.float64)


if __name__ == "__main__":
    # Small synthetic config (PRETRAINED_EMBEDDING_SIZE scaled down to 128).
    B, T, S = 4, 16, 8          # batch, tokenized length (incl CLS/SEP), max words
    F, O = 128, 128             # in_dim, we_out_dim (is_transform=True)
    VOCAB = 100

    key = jax.random.PRNGKey(0)
    k_emb, k_ids, k_w, k_b = jax.random.split(key, 4)

    # Synthetic "pretrained model": deterministic embedding table lookup.
    emb_table = jax.random.normal(k_emb, (VOCAB, F), dtype=jnp.float32)
    input_ids = jax.random.randint(k_ids, (B, T), 0, VOCAB)
    embedded_sentences = emb_table[input_ids]                  # (B, T, F)

    # Word segmentation metadata (offsets sum + 2 (CLS/SEP) <= tokenized length).
    sentence_lengths = jnp.array([6, 8, 4, 7], dtype=jnp.int32)
    word_offsets = jnp.array(
        [[1, 2, 1, 3, 1, 2, 0, 0],
         [2, 1, 1, 2, 1, 3, 2, 2],
         [3, 1, 2, 4, 0, 0, 0, 0],
         [1, 1, 2, 1, 2, 1, 3, 0]], dtype=jnp.int32)

    # Projection (nn.Linear(in_dim, out_dim)) parameters, deterministic.
    proj_w = jax.random.normal(k_w, (O, F), dtype=jnp.float32) * 0.05
    proj_b = jax.random.normal(k_b, (O,), dtype=jnp.float32) * 0.05

    # bf16 operands -> use a looser tolerance than the previous f32 version.
    tol = dict(rtol=2e-2, atol=2e-2)

    for mode in ("avg", "right", "left"):
        out = pretrained_word_embedding_forward(
            sentence_lengths, embedded_sentences, word_offsets, proj_w, proj_b,
            pos_extraction_mode=mode)
        out = jax.block_until_ready(out)
        ref = _reference(sentence_lengths, embedded_sentences, word_offsets,
                         proj_w, proj_b, mode=mode)
        np.testing.assert_allclose(np.asarray(out, dtype=np.float64), ref, **tol)

    print("KERNEL_OK")
</pallas_src>

<mosaic_0001>
module attributes {stable_mosaic.version = 11 : i64} {
  func.func @_word_pool_project_kernel(%arg0: i32, %arg1: memref<2x1x8xi32, #tpu.memory_space<vmem>>, %arg2: memref<2x1x8xi32, #tpu.memory_space<vmem>>, %arg3: memref<2x16x128xbf16, #tpu.memory_space<vmem>>, %arg4: memref<128x128xbf16, #tpu.memory_space<vmem>>, %arg5: memref<1x128xf32, #tpu.memory_space<vmem>>, %arg6: memref<2x8x128xf32, #tpu.memory_space<vmem>>) attributes {dimension_semantics = [#tpu.dimension_semantics<parallel>], iteration_bounds = array<i64: 2>, scalar_prefetch = 0 : i64, scratch_operands = 0 : i64, tpu.core_type = #tpu.core_type<tc>, window_params = [{transform_indices = @transform_0, window_bounds = array<i64: 2, 1, 8>}, {transform_indices = @transform_1, window_bounds = array<i64: 2, 1, 8>}, {transform_indices = @transform_2, window_bounds = array<i64: 2, 16, 128>}, {pipeline_mode = #tpu.pipeline_mode<synchronous>, transform_indices = @transform_3, window_bounds = array<i64: 128, 128>}, {pipeline_mode = #tpu.pipeline_mode<synchronous>, transform_indices = @transform_4, window_bounds = array<i64: 1, 128>}, {transform_indices = @transform_5, window_bounds = array<i64: 2, 8, 128>}]} {
    %c0 = arith.constant 0 : index
    %c0_0 = arith.constant 0 : index
    %c0_1 = arith.constant 0 : index
    %0 = vector.load %arg1[%c0, %c0_0, %c0_1] : memref<2x1x8xi32, #tpu.memory_space<vmem>>, vector<2x1x8xi32>
    %c0_2 = arith.constant 0 : index
    %c0_3 = arith.constant 0 : index
    %c0_4 = arith.constant 0 : index
    %1 = vector.load %arg2[%c0_2, %c0_3, %c0_4] : memref<2x1x8xi32, #tpu.memory_space<vmem>>, vector<2x1x8xi32>
    %2 = tpu.iota {dimensions = array<i32: 1>} : vector<2x16x8xi32>
    %3 = vector.broadcast %0 : vector<2x1x8xi32> to vector<2x16x8xi32>
    %4 = arith.cmpi sge, %2, %3 : vector<2x16x8xi32>
    %5 = arith.addi %0, %1 : vector<2x1x8xi32>
    %6 = vector.broadcast %5 : vector<2x1x8xi32> to vector<2x16x8xi32>
    %7 = arith.cmpi slt, %2, %6 : vector<2x16x8xi32>
    %8 = arith.andi %4, %7 : vector<2x16x8xi1>
    %c1_i32 = arith.constant 1 : i32
    %9 = vector.broadcast %c1_i32 : i32 to vector<2x1x8xi32>
    %10 = arith.maxsi %1, %9 : vector<2x1x8xi32>
    %11 = arith.sitofp %10 : vector<2x1x8xi32> to vector<2x1x8xf32>
    %c0_i32 = arith.constant 0 : i32
    %12 = vector.broadcast %c0_i32 : i32 to vector<2x1x8xi32>
    %13 = arith.cmpi sgt, %1, %12 : vector<2x1x8xi32>
    %14 = tpu.reciprocal %11 {approx = true} : vector<2x1x8xf32> -> vector<2x1x8xf32>
    %cst = arith.constant 0.000000e+00 : f32
    %15 = vector.broadcast %cst : f32 to vector<2x1x8xf32>
    %16 = arith.select %13, %14, %15 : vector<2x1x8xi1>, vector<2x1x8xf32>
    %cst_5 = arith.constant 0.000000e+00 : f32
    %17 = vector.shape_cast %16 : vector<2x1x8xf32> to vector<2x1x8xf32>
    %18 = vector.broadcast %17 : vector<2x1x8xf32> to vector<2x16x8xf32>
    %19 = vector.broadcast %cst_5 : f32 to vector<2x16x8xf32>
    %20 = arith.select %8, %18, %19 : vector<2x16x8xi1>, vector<2x16x8xf32>
    %21 = arith.truncf %20 : vector<2x16x8xf32> to vector<2x16x8xbf16>
    %c0_6 = arith.constant 0 : index
    %c0_7 = arith.constant 0 : index
    %c0_8 = arith.constant 0 : index
    %22 = vector.load %arg3[%c0_6, %c0_7, %c0_8] : memref<2x16x128xbf16, #tpu.memory_space<vmem>>, vector<2x16x128xbf16>
    "tpu.trace_start"() <{level = 10 : i32, message = "bts,btf->bsf"}> : () -> ()
    %cst_9 = arith.constant dense<0.000000e+00> : vector<2x8x128xf32>
    %23 = tpu.matmul %21, %22, %cst_9 {dimension_numbers = #tpu.dot_dimension_numbers<[1], [1], [2], [2], [0, 0, 0, 2, 1, 2], [0], [0]>} : vector<2x16x8xbf16>, vector<2x16x128xbf16>, vector<2x8x128xf32> -> vector<2x8x128xf32>
    "tpu.trace_stop"() : () -> ()
    %24 = vector.shape_cast %23 : vector<2x8x128xf32> to vector<16x128xf32>
    %25 = arith.truncf %24 : vector<16x128xf32> to vector<16x128xbf16>
    %c0_10 = arith.constant 0 : index
    %c0_11 = arith.constant 0 : index
    %26 = vector.load %arg4[%c0_10, %c0_11] : memref<128x128xbf16, #tpu.memory_space<vmem>>, vector<128x128xbf16>
    %cst_12 = arith.constant dense<0.000000e+00> : vector<16x128xf32>
    %27 = tpu.matmul %25, %26, %cst_12 {dimension_numbers = #tpu.dot_dimension_numbers<[1], [0], [0], [1], [0, 0, 1, 1], [], []>} : vector<16x128xbf16>, vector<128x128xbf16>, vector<16x128xf32> -> vector<16x128xf32>
    %c0_13 = arith.constant 0 : index
    %c0_14 = arith.constant 0 : index
    %28 = vector.load %arg5[%c0_13, %c0_14] : memref<1x128xf32, #tpu.memory_space<vmem>>, vector<1x128xf32>
    %29 = vector.broadcast %28 : vector<1x128xf32> to vector<16x128xf32>
    %30 = arith.addf %27, %29 : vector<16x128xf32>
    %31 = vector.shape_cast %30 : vector<16x128xf32> to vector<2x8x128xf32>
    %c0_15 = arith.constant 0 : index
    %c0_16 = arith.constant 0 : index
    %c0_17 = arith.constant 0 : index
    %32 = vector.load %arg6[%c0_15, %c0_16, %c0_17] : memref<2x8x128xf32, #tpu.memory_space<vmem>>, vector<2x8x128xf32>
    tpu.vector_store %arg6[%c0_15, %c0_16, %c0_17], %31 {strides = array<i32>} : memref<2x8x128xf32, #tpu.memory_space<vmem>>, vector<2x8x128xf32>,
    return
  }
  func.func @transform_0(%arg0: i32) -> (i32, i32, i32) {
    %c0_i32 = arith.constant 0 : i32
    %c0_i32_0 = arith.constant 0 : i32
    %c0_i32_1 = arith.constant 0 : i32
    return %arg0, %c0_i32, %c0_i32_0 : i32, i32, i32
  }
  func.func @transform_1(%arg0: i32) -> (i32, i32, i32) {
    %c0_i32 = arith.constant 0 : i32
    %c0_i32_0 = arith.constant 0 : i32
    %c0_i32_1 = arith.constant 0 : i32
    return %arg0, %c0_i32, %c0_i32_0 : i32, i32, i32
  }
  func.func @transform_2(%arg0: i32) -> (i32, i32, i32) {
    %c0_i32 = arith.constant 0 : i32
    %c0_i32_0 = arith.constant 0 : i32
    %c0_i32_1 = arith.constant 0 : i32
    return %arg0, %c0_i32, %c0_i32_0 : i32, i32, i32
  }
  func.func @transform_3(%arg0: i32) -> (i32, i32) {
    %c0_i32 = arith.constant 0 : i32
    %c0_i32_0 = arith.constant 0 : i32
    %c0_i32_1 = arith.constant 0 : i32
    return %c0_i32, %c0_i32_0 : i32, i32
  }
  func.func @transform_4(%arg0: i32) -> (i32, i32) {
    %c0_i32 = arith.constant 0 : i32
    %c0_i32_0 = arith.constant 0 : i32
    %c0_i32_1 = arith.constant 0 : i32
    return %c0_i32, %c0_i32_0 : i32, i32
  }
  func.func @transform_5(%arg0: i32) -> (i32, i32, i32) {
    %c0_i32 = arith.constant 0 : i32
    %c0_i32_0 = arith.constant 0 : i32
    %c0_i32_1 = arith.constant 0 : i32
    return %arg0, %c0_i32, %c0_i32_0 : i32, i32, i32
  }
}

</mosaic_0001>

<bundles_post_ra>
// kernel: tpu_custom_call.1
= control target key start
LH: loop header
LB: loop body
LE: loop exit
PB: predicated region body
PF: predicated region fallthrough
CT: control target
= control target key end

     0   :  { %s1627_s0 = inlined_call_operand.hbm [shape: s32[4,1,8], index: 0, kind: input, shape index: {}]   ;;  %s1628_s1 = inlined_call_operand.hbm [shape: s32[4,1,8], index: 1, kind: input, shape index: {}]   ;;  %s1629_s2 = inlined_call_operand.hbm [shape: bf16[4,16,128], index: 2, kind: input, shape index: {}]   ;;  %s1630_s3 = inlined_call_operand.hbm [shape: bf16[128,128], index: 3, kind: input, shape index: {}]   ;;  %s1631_s4 = inlined_call_operand.hbm [shape: f32[1,128], index: 4, kind: input, shape index: {}]   ;;  %s1632_s5 = inlined_call_operand.hbm [shape: f32[4,8,128], index: 5, kind: output, shape index: {}]  }
   0x1   :  { %1648 = sst [smem:[#allocation18_spill]] %s1628_s1 }
   0x2   :  { %1649 = sst [smem:[#allocation19_spill]] %s1630_s3 }
   0x3   :  { %10 = vsyncpa [#allocation3], 0 }
   0x4   :  { %12 = vsyncpa [#allocation3 + $0x1], 0 }
   0x5   :  { %13 = vsyncpa [#allocation6], 0 }
   0x6   :  { %15 = vsyncpa [#allocation6 + $0x1], 0 }
   0x7   :  { %16 = vsyncpa [#allocation9], 0 }
   0x8   :  { %17 = vsyncpa [#allocation4], 0 }
   0x9   :  { %19 = vsyncpa [#allocation4 + $0x1], 0  ;;  %s1275_s18 = smov 0   ;;  %s1277_s19 = smov 0  }
   0xa   :  { %s1279_s20 = smov 0   ;;  %s1281_s21 = smov 0  }
   0xb LB: > { %1650 = sst [smem:[#allocation16_spill]] %s1225_s20  ;;  %s1296_s22 = sadd.s32 4294967295, %s1229_s21   ;;  %s1229_s21 = sphi %s1281_s21, %s1687_s21   ;;  %s1225_s20 = sphi %s1279_s20, %s1684_s20   ;;  %s1221_s19 = sphi %s1277_s19, %s1686_s19   ;;  %s1217_s18 = sphi %s1275_s18, %s1685_s18  }
   0xc   : > { %s819_s23 = sadd.s32 4294967294, %s1229_s21   ;;  %s1300_s24 = sadd.s32 1, %s1229_s21  }
   0xd   : > { %s32_s25 = sadd.s32 1, %s1225_s20  ;;  %s29_s26 = ssub.s32 %s1229_s21, %s1300_s24 }
   0xe   : > { %p39_p0 = scmp.ne.s32.totalorder %s1225_s20, %s1221_s19  ;;  %p30_p1 = scmp.eq.s32.totalorder %s29_s26, 0 }
   0xf   : > { %p40_p2 = scmp.eq.s32.totalorder %s1229_s21, 0  ;;  %p45_p3 = scmp.ne.s32.totalorder %s1221_s19, %s1217_s18 }
  0x10   : > { %p1633_p4 = scmp.eq.s32.totalorder %s1296_s22, 0  ;;  %p163_p7 = scmp.eq.s32.totalorder %s1296_s22, 1 }
  0x11   : > { %s1312_s27 = scalar_select %p30_p1, %s1225_s20, %s32_s25  }
  0x12   : > { %p1314_p5 = por %p40_p2, %p39_p0  ;;  %p1320_p6 = por %p1633_p4, %p45_p3 }
  0x13   : > { %1651 = sst [smem:[#allocation17_spill]] %s1312_s27  ;;  %p169_p8 = scmp.eq.s32.totalorder %s819_s23, 1 }
  0x14   : > { %s1652_s28 = scalar_select %p1314_p5, 1, 0 }
  0x15   : > { %s1653_s29 = scalar_select %p1320_p6, 1, 0 }
  0x16   : > { %p820_p9 = scmp.ge.s32.totalorder %s1229_s21, 1  ;;  %p176_p10 = scmp.lt.s32.totalorder %s1229_s21, 3 }
  0x17   : > { %p1327_p11 = por %p163_p7, %p39_p0  ;;  %p1331_p12 = por %p169_p8, %p45_p3 }
  0x18   : > { %p1335_p13 = pnand %p820_p9, %p176_p10  ;;  %s1231_s8 = smov [#allocation8]  }
  0x19   : > { %s1654_s30 = scalar_select %p1327_p11, 1, 0 }
  0x1a   : > { %s1655_s6 = scalar_select %p1331_p12, 1, 0 }
  0x1b   : > { %s1656_s7 = scalar_select %p1335_p13, 1, 0 }
  0x1c   : > { %p925_p1 = pneg %p1335_p13  ;;  %s188_s9 = sshll.u32 %s1231_s8, 4  ;;  %s189_s9 = int_to_ptr.vmem [resolvable:$true] %s188_s9 }
  0x1d   : > { %s1350_s11 = sand.u32 1, %s1225_s20   ;;  %s1658_s3 = sld [smem:[#allocation19_spill]] }
  0x1e   : > { %p1343_p2 = pnand %p925_p1, %p1633_p4 }
  0x20   : > { %s1657_s10 = scalar_select %p1343_p2, 1, 0 }
  0x21   : > { %p1639_p8 = pneg %p1343_p2 }
  0x23   : > { %s1009_s15 = scalar_lea.hbm %s1658_s3, 1024 }
  0x24   : > { %p1010_p7 = scmp.ne.s32.totalorder %s1658_s3, %s1009_s15  ;;  %p1016_p1 = scmp.lt.u32.totalorder %s1009_s15, %s1658_s3 }
  0x26   : > { %p1012_p9 = pnand %p1639_p8, %p1010_p7 }
  0x28   : > { %p1013_p10 = pneg %p1012_p9 }
  0x2a   : > { %p1018_p0 = pnand %p1016_p1, %p1013_p10 }
  0x2c   : > { %1021 = shalt.err (!%p1018_p0)
}
  0x2d   : > { %s1022_s26 = scalar_lea.vmem %s189_s9, 1024  ;;  %p1030_p11 = scmp.lt.s32.totalorder %s189_s9, %s189_s9 }
  0x2e   : > { %p1023_p4 = scmp.ne.s32.totalorder %s189_s9, %s1022_s26  ;;  %p1031_p6 = scmp.lt.s32.totalorder %s1022_s26, %s1022_s26 }
  0x30   : > { %p1025_p3 = pnand %p1023_p4, %p1639_p8  ;;  %p1032_p13 = por %p1031_p6, %p1030_p11 }
  0x32   : > { %p1026_p12 = pneg %p1025_p3 }
  0x34   : > { %p1033_p5 = pnand %p1032_p13, %p1026_p12 }
  0x36   : > { %1036 = shalt.err (!%p1033_p5)
}
  0x37   : > { %s1637_s8 = smov 64   ;;  %s1638_s13 = smov 4  }
  0x38   : > { %928 = dma.hbm_to_vmem [thread:$0]  (!%p1343_p2), %s1658_s3, 1024, %s189_s9, [#allocation9], %s1637_s8, %s1637_s8, %s1638_s13  }
  0x39   : > { %s1642_s16 = sshll.u32 %s1229_s21, 5  ;;  %p1659_p4 = scmp.ne.s32.totalorder %s1652_s28, 0 }
  0x3a   : > { %p1660_p5 = scmp.lt.s32.totalorder %s1229_s21, 2  ;;  %s234_s23 = sand.u32 1, %s1229_s21  }
  0x3b   : > { %s1662_s1 = sld [smem:[#allocation18_spill]]  ;;  %s1663_s27 = sshll.u32 %s1350_s11, 1 }
  0x3c   : > { %p1383_p6 = pnand %p1660_p5, %p1659_p4  ;;  %s238_s9 = scalar_lea.vmem [#allocation5], %s1663_s27 }
  0x3d   : > { %s245_s28 = sshll.u32 %s238_s9, 4  ;;  %s1399_s14 = scalar_lea.sflag [#allocation6], %s234_s23  ;;  %s1397_s28 = int_to_ptr.vmem [resolvable:$true] %s245_s28 }
  0x3e   : > { %s1661_s17 = scalar_select %p1383_p6, 1, 0 }
  0x3f   : > { %p1405_p12 = pneg %p1383_p6 }
  0x41   : > { %s1393_s12 = scalar_lea.hbm %s1662_s1, %s1642_s16  ;;  %s1042_s27 = scalar_lea.hbm %s1662_s1, 64 }
  0x42   : > { %s1037_s15 = scalar_lea.hbm %s1393_s12, 32  ;;  %p1043_p3 = scmp.lt.u32.totalorder %s1393_s12, %s1662_s1 }
  0x43   : > { %p1038_p11 = scmp.ne.s32.totalorder %s1393_s12, %s1037_s15  ;;  %p1044_p7 = scmp.lt.u32.totalorder %s1042_s27, %s1037_s15 }
  0x44   : > { %s1664_s8 = scalar_select %p1405_p12, 1, 0 }
  0x45   : > { %p1040_p13 = pnand %p1405_p12, %p1038_p11  ;;  %p1045_p9 = por %p1044_p7, %p1043_p3 }
  0x46   : > { %p1046_p10 = scmp.lt.u32.totalorder %s1037_s15, %s1393_s12 }
  0x47   : > { %p1041_p0 = pneg %p1040_p13 }
  0x48   : > { %p1047_p1 = por %p1046_p10, %p1045_p9 }
  0x4a   : > { %p1048_p4 = pnand %p1047_p1, %p1041_p0 }
  0x4c   : > { %1051 = shalt.err (!%p1048_p4)
}
  0x4d   : > { %s1052_s23 = scalar_lea.vmem %s1397_s28, 32  ;;  %s1234_s25 = smov [#allocation5]  }
  0x4e   : > { %p1053_p5 = scmp.ne.s32.totalorder %s1397_s28, %s1052_s23  ;;  %s1057_s26 = sshll.u32 %s1234_s25, 4  ;;  %s1058_s26 = int_to_ptr.vmem [resolvable:$false] %s1057_s26 }
  0x4f   : > { %s1059_s13 = scalar_lea.vmem %s1058_s26, 64  ;;  %p1060_p8 = scmp.lt.s32.totalorder %s1397_s28, %s1058_s26 }
  0x50   : > { %p1055_p11 = pnand %p1053_p5, %p1405_p12  ;;  %p1061_p2 = scmp.lt.s32.totalorder %s1059_s13, %s1052_s23 }
  0x52   : > { %p1056_p13 = pneg %p1055_p11  ;;  %p1062_p3 = por %p1061_p2, %p1060_p8 }
  0x54   : > { %p1063_p7 = pnand %p1062_p3, %p1056_p13 }
  0x56   : > { %1066 = shalt.err (!%p1063_p7)
}
  0x57   : > { %s1235_s15 = smov 16   ;;  %s1236_s27 = smov 1  }
  0x58   : > { %938 = dma.hbm_to_vmem [thread:$0]  (!%p1383_p6), %s1393_s12, 32, %s1397_s28, %s1399_s14, %s1235_s15, %s1235_s15, %s1236_s27  }
  0x59   : > { %s1237_s9 = smov [#allocation10]   ;;  %s1067_s13 = scalar_lea.hbm %s1631_s4, 16 }
  0x5a   : > { %s202_s25 = sshll.u32 %s1237_s9, 4  ;;  %p1068_p2 = scmp.ne.s32.totalorder %s1631_s4, %s1067_s13  ;;  %s203_s25 = int_to_ptr.vmem [resolvable:$true] %s202_s25 }
  0x5b   : > { %p1665_p8 = scmp.ne.s32.totalorder %s1657_s10, 0  ;;  %p1074_p1 = scmp.lt.u32.totalorder %s1067_s13, %s1631_s4 }
  0x5d   : > { %p1666_p0 = pneg %p1665_p8 }
  0x5f   : > { %p1070_p9 = pnand %p1068_p2, %p1666_p0 }
  0x61   : > { %p1071_p10 = pneg %p1070_p9 }
  0x63   : > { %p1076_p4 = pnand %p1074_p1, %p1071_p10 }
  0x65   : > { %1079 = shalt.err (!%p1076_p4)
}
  0x66   : > { %s1080_s12 = scalar_lea.vmem %s203_s25, 16  ;;  %p1667_p11 = pmov %p1666_p0 }
  0x67   : > { %p1081_p5 = scmp.ne.s32.totalorder %s203_s25, %s1080_s12  ;;  %s1087_s28 = scalar_lea.vmem %s203_s25, 32 }
  0x68   : > { %p1088_p7 = scmp.lt.s32.totalorder %s203_s25, %s203_s25  ;;  %p1089_p6 = scmp.lt.s32.totalorder %s1087_s28, %s1080_s12 }
  0x69   : > { %p1083_p13 = pnand %p1081_p5, %p1667_p11 }
  0x6a   : > { %p1090_p12 = por %p1089_p6, %p1088_p7 }
  0x6b   : > { %p1084_p3 = pneg %p1083_p13 }
  0x6d   : > { %p1091_p0 = pnand %p1090_p12, %p1084_p3 }
  0x6f   : > { %1094 = shalt.err (!%p1091_p0)
}
  0x70   : > { %931 = dma.hbm_to_vmem [thread:$0]  (!%p1665_p8), %s1631_s4, 16, %s203_s25, [#allocation9]  }
  0x71   : > { %s1668_s20 = sshll.u32 %s1229_s21, 5  ;;  %s1669_s23 = sshll.u32 %s1350_s11, 1 }
  0x72   : > { %s1457_s26 = scalar_lea.hbm %s1627_s0, %s1668_s20  ;;  %s217_s10 = scalar_lea.vmem [#allocation2], %s1669_s23 }
  0x73   : > { %s224_s13 = sshll.u32 %s217_s10, 4  ;;  %s830_s12 = sshll.u32 %s1350_s11, 4  ;;  %s1461_s13 = int_to_ptr.vmem [resolvable:$true] %s224_s13 }
  0x74   : > { %s214_s28 = scalar_lea.sflag [#allocation3], %s1350_s11  ;;  %s1095_s1 = scalar_lea.hbm %s1457_s26, 32 }
  0x75   : > { %p1096_p6 = scmp.ne.s32.totalorder %s1457_s26, %s1095_s1  ;;  %p1670_p12 = scmp.ne.s32.totalorder %s1664_s8, 0 }
  0x76   : > { %s1100_s20 = scalar_lea.hbm %s1627_s0, 64  ;;  %p1101_p9 = scmp.lt.u32.totalorder %s1457_s26, %s1627_s0 }
  0x77   : > { %p1098_p2 = pnand %p1096_p6, %p1670_p12  ;;  %p1102_p10 = scmp.lt.u32.totalorder %s1100_s20, %s1095_s1 }
  0x78   : > { %p1104_p4 = scmp.lt.u32.totalorder %s1095_s1, %s1457_s26 }
  0x79   : > { %p1099_p8 = pneg %p1098_p2  ;;  %p1103_p1 = por %p1102_p10, %p1101_p9 }
  0x7b   : > { %p1105_p5 = por %p1104_p4, %p1103_p1 }
  0x7d   : > { %p1106_p11 = pnand %p1105_p5, %p1099_p8 }
  0x7f   : > { %1109 = shalt.err (!%p1106_p11)
}
  0x80   : > { %s1110_s23 = scalar_lea.vmem %s1461_s13, 32  ;;  %s1238_s10 = smov [#allocation2]  }
  0x81   : > { %p1111_p13 = scmp.ne.s32.totalorder %s1461_s13, %s1110_s23  ;;  %s1115_s25 = sshll.u32 %s1238_s10, 4  ;;  %s1116_s25 = int_to_ptr.vmem [resolvable:$false] %s1115_s25 }
  0x82   : > { %s1117_s3 = scalar_lea.vmem %s1116_s25, 64  ;;  %p1118_p0 = scmp.lt.s32.totalorder %s1461_s13, %s1116_s25 }
  0x83   : > { %p1113_p3 = pnand %p1111_p13, %p1670_p12  ;;  %p1119_p6 = scmp.lt.s32.totalorder %s1117_s3, %s1110_s23 }
  0x85   : > { %p1114_p7 = pneg %p1113_p3  ;;  %p1120_p2 = por %p1119_p6, %p1118_p0 }
  0x87   : > { %p1121_p9 = pnand %p1120_p2, %p1114_p7 }
  0x89   : > { %1124 = shalt.err (!%p1121_p9)
}
  0x8a   : > { %p1671_p8 = scmp.ne.s32.totalorder %s1661_s17, 0  ;;  %s862_s1 = sshll.u32 %s1229_s21, 8 }
  0x8b   : > { %s1495_s9 = scalar_lea.hbm %s1629_s2, %s862_s1  ;;  %s259_s23 = scalar_lea.vmem [#allocation7], %s830_s12 }
  0x8c   : > { %935 = dma.hbm_to_vmem [thread:$0]  (!%p1671_p8), %s1457_s26, 32, %s1461_s13, %s214_s28, %s1235_s15, %s1235_s15, %s1236_s27  }
  0x8d   : > { %s267_s10 = sshll.u32 %s259_s23, 4  ;;  %s1125_s25 = scalar_lea.hbm %s1495_s9, 256  ;;  %s1499_s10 = int_to_ptr.vmem [resolvable:$true] %s267_s10 }
  0x8e   : > { %p1126_p10 = scmp.ne.s32.totalorder %s1495_s9, %s1125_s25  ;;  %s1130_s26 = scalar_lea.hbm %s1629_s2, 512 }
  0x8f   : > { %p1131_p5 = scmp.lt.u32.totalorder %s1495_s9, %s1629_s2  ;;  %p1132_p11 = scmp.lt.u32.totalorder %s1130_s26, %s1125_s25 }
  0x90   : > { %p1128_p1 = pnand %p1126_p10, %p1670_p12  ;;  %p1134_p3 = scmp.lt.u32.totalorder %s1125_s25, %s1495_s9 }
  0x91   : > { %p1133_p13 = por %p1132_p11, %p1131_p5 }
  0x92   : > { %p1129_p4 = pneg %p1128_p1 }
  0x93   : > { %p1135_p7 = por %p1134_p3, %p1133_p13 }
  0x95   : > { %p1136_p0 = pnand %p1135_p7, %p1129_p4 }
  0x97   : > { %1139 = shalt.err (!%p1136_p0)
}
  0x98   : > { %s1140_s11 = scalar_lea.vmem %s1499_s10, 256  ;;  %s1239_s12 = smov [#allocation7]  }
  0x99   : > { %p1141_p6 = scmp.ne.s32.totalorder %s1499_s10, %s1140_s11  ;;  %s1145_s3 = sshll.u32 %s1239_s12, 4  ;;  %s1146_s3 = int_to_ptr.vmem [resolvable:$false] %s1145_s3 }
  0x9a   : > { %s1147_s1 = scalar_lea.vmem %s1146_s3, 512  ;;  %p1148_p10 = scmp.lt.s32.totalorder %s1499_s10, %s1146_s3 }
  0x9b   : > { %p1143_p2 = pnand %p1141_p6, %p1670_p12  ;;  %p1149_p1 = scmp.lt.s32.totalorder %s1147_s1, %s1140_s11 }
  0x9d   : > { %p1144_p9 = pneg %p1143_p2  ;;  %p1150_p5 = por %p1149_p1, %p1148_p10 }
  0x9f   : > { %p1151_p11 = pnand %p1150_p5, %p1144_p9 }
  0xa1   : > { %1154 = shalt.err (!%p1151_p11)
}
  0xa2   : > { %s1672_s20 = smov 4   ;;  %s1673_s16 = smov 64  }
  0xa3   : > { %941 = dma.hbm_to_vmem [thread:$0]  (!%p1671_p8), %s1495_s9, 256, %s1499_s10, %s1399_s14, %s1673_s16, %s1673_s16, %s1672_s20  }
  0xa4   : > { %p1674_p12 = scmp.ne.s32.totalorder %s1656_s7, 0 }
  0xa5   : > { %s1529_s8 = sand.u32 (!%p1674_p12), 1, %s1221_s19   ;;  %p1675_p4 = scmp.ne.s32.totalorder (!%p1674_p12), %s1653_s29, 0 }
  0xa6   : > { %279 = sbr.rel (%p1674_p12) target bundleno = 758 (0x2f6), region = 40  ;;  %s835_s23 = sshll.u32 (!%p1674_p12), %s1529_s8, 1 }
  0xa7   : > { %s282_s25 = scalar_lea.sflag (!%p1674_p12), [#allocation3], %s1529_s8  ;;  %s285_s15 = scalar_lea.vmem (!%p1674_p12), [#allocation2], %s835_s23 }
  0xad   : > { %1200 = dma.done.wait (%p1675_p4), %s282_s25, 32  }
  0xae   : > { %1202 = vsyncadd (%p1675_p4), %s282_s25, 4294967264  ;;  %s290_s17 = sand.u32 1, %s1296_s22   ;;  %s294_s7 = scalar_lea.vmem [#allocation5], %s835_s23 }
  0xaf   : > { %s291_s14 = scalar_lea.sflag [#allocation6], %s290_s17 }
  0xb0   : > { %1204 = dma.done.wait (%p1675_p4), %s291_s14, 288  }
  0xb1   : > { %1206 = vsyncadd (%p1675_p4), %s291_s14, 4294967008  ;;  %s837_s9 = sshll.u32 %s1529_s8, 4  ;;  %p1676_p8 = scmp.eq.s32.totalorder %s1296_s22, 0 }
  0xb2   : > { %s1545_s10 = scalar_lea.vmem [#allocation7], %s837_s9 }
  0xb3   : > { %1208 = dma.done.wait (%p1676_p8), [#allocation9], 1040   ;;  %p1677_p13 = pmov %p1676_p8 }
  0xb4   : > { %v1240_v0 = vmov 0.0   ;;  %vm1241_vm0 = vmmov 0   ;;  %v357_v1 = vlaneseq  ;;  %v353_v2 = vld [vmem:[%s285_s15] sm:$0x1]  ;;  %v355_v3 = vld [vmem:[%s294_s7] sm:$0x1] }
  0xb5   : > { %1210 = vsyncadd (%p1677_p13), [#allocation9], 4294966256  ;;  %877 = vmatprep.subr.bf16.mxu1 %v1240_v0  ;;  %879 = vmatprep.mubr.msk.bf16.mxu1 %vm1241_vm0, %v1240_v0  ;;  %vm390_vm1 = vcmp.gt.s32.totalorder %v355_v3, 1  ;;  %v354_v5 = vld [vmem:[%s285_s15 + $0x1] sm:$0x1]  ;;  %v995_v8 = vld [vmem:[%s1545_s10] sm:$0xff]   ;;  %v372_v11 = vadd.s32 %v355_v3, %v353_v2 }
  0xb6   : > { %889 = vmatprep.subr.bf16.mxu0 %v1240_v0  ;;  %905 = vmatprep.mubr.msk.bf16.mxu0 %vm1241_vm0, %v1240_v0  ;;  %v358_v4 = vshrl.u32 %v357_v1, 7  ;;  %v356_v6 = vld [vmem:[%s294_s7 + $0x1] sm:$0x1]  ;;  %v391_v7 = vsel %vm390_vm1, %v355_v3, 1  ;;  %v997_v14 = vld [vmem:[#allocation8] sm:$0xff]   ;;  %v998_v16 = vld [vmem:[#allocation8 + $0x8] sm:$0xff]  }
  0xb7   : > { %vm392_vm2 = vcmp.gt.s32.totalorder %v356_v6, 1  ;;  %v394_v9 = vcvt.s32.f32 %v391_v7  ;;  %878 = vmatpush3.bf16.msra.mxu1 %v995_v8  ;;  %v373_v15 = vadd.s32 %v356_v6, %v354_v5  ;;  %890 = vmatpush3.bf16.msra.mxu0 %v997_v14  ;;  %v999_v22 = vld [vmem:[#allocation8 + $0x10] sm:$0xff]   ;;  %vm396_vm7 = vcmp.gt.s32.totalorder %v355_v3, 0  ;;  %v1000_v25 = vld [vmem:[#allocation8 + $0x18] sm:$0xff]   ;;  %v1001_v33 = vld [vmem:[#allocation8 + $0x20] sm:$0xff]   ;;  %s347_s29 = scalar_lea.vmem [#allocation11], %s837_s9 }
  0xb8   : > { %v362_v10 = vsub.s32 0, %v358_v4  ;;  %v393_v12 = vsel %vm392_vm2, %v356_v6, 1  ;;  %883 = vmatprep.subr.bf16.mxu1 %v1240_v0  ;;  %891 = vmatprep.subr.bf16.mxu0 %v1240_v0  ;;  %v359_v19 = vadd.s32 8, %v358_v4  ;;  %vm397_vm13 = vcmp.gt.s32.totalorder %v356_v6, 0  ;;  %v996_v38 = vld [vmem:[%s1545_s10 + $0x8] sm:$0xff]   ;;  %v1003_v42 = vld [vmem:[#allocation8 + $0x30] sm:$0xff]  }
  0xb9   : > { %1005 = vrcp.f32 %v394_v9  ;;  %v395_v13 = vcvt.s32.f32 %v393_v12  ;;  %vm446_vm2 = vcmask 130048   ;;  %v1002_v41 = vld [vmem:[#allocation8 + $0x28] sm:$0xff]   ;;  %v1004_v43 = vld [vmem:[#allocation8 + $0x38] sm:$0xff]   ;;  %v845_v53 = vld [vmem:[#allocation10] ss:$0 sm:$0xff]  ;;  %s684_s27 = sshll.u32 %s347_s29, 4  ;;  %s1578_s27 = int_to_ptr.vmem [resolvable:$true] %s684_s27 }
  0xba   : > { %v363_v17 = vrot.slane %v353_v2, %v362_v10  ;;  %v377_v18 = vrot.slane %v372_v11, %v362_v10  ;;  %v367_v20 = vrot.slane %v354_v5, %v362_v10  ;;  %v381_v21 = vrot.slane %v373_v15, %v362_v10  ;;  %s863_s26 = sshll.u32 %s1296_s22, 8  ;;  %s671_s12 = scalar_lea.sflag [#allocation4], %s1529_s8 }
  0xbb   : > { %1007 = vrcp.f32 %v395_v13  ;;  %892 = vmatpush3.bf16.msra.mxu0 %v998_v16  ;;  %s1583_s11 = scalar_lea.hbm %s1632_s5, %s863_s26  ;;  %s1155_s22 = scalar_lea.vmem %s1578_s27, 256 }
  0xbc   : > { %vm368_vm3 = vcmp.ge.s32.totalorder %v358_v4, %v363_v17  ;;  %vm382_vm4 = vcmp.lt.s32.totalorder %v358_v4, %v377_v18  ;;  %893 = vmatprep.subr.bf16.mxu0 %v1240_v0  ;;  %vm369_vm5 = vcmp.ge.s32.totalorder %v359_v19, %v363_v17  ;;  %vm383_vm6 = vcmp.lt.s32.totalorder %v359_v19, %v377_v18  ;;  %p1156_p3 = scmp.ne.s32.totalorder %s1578_s27, %s1155_s22  ;;  %p1680_p7 = scmp.ne.s32.totalorder %s1654_s30, 0 }
  0xbd   : > { %vm370_vm8 = vcmp.ge.s32.totalorder %v358_v4, %v367_v20  ;;  %vm384_vm9 = vcmp.lt.s32.totalorder %v358_v4, %v381_v21  ;;  %vm1561_vm10 = vmand %vm368_vm3, %vm382_vm4  ;;  %vm371_vm11 = vcmp.ge.s32.totalorder %v359_v19, %v367_v20  ;;  %vm385_vm12 = vcmp.lt.s32.totalorder %v359_v19, %v381_v21  ;;  %s1242_s3 = smov [#allocation11]  }
  0xbe   : > { %vm387_vm14 = vmand %vm369_vm5, %vm383_vm6  ;;  %p1157_p0 = pnand %p1156_p3, %p1680_p7  ;;  %s1159_s1 = sshll.u32 %s1242_s3, 4  ;;  %s1160_s1 = int_to_ptr.vmem [resolvable:$false] %s1159_s1 }
  0xbf   : > { %894 = vmatpush3.bf16.msra.mxu0 %v999_v22  ;;  %vm388_vm15 = vmand %vm370_vm8, %vm384_vm9  ;;  %s1161_s20 = scalar_lea.vmem %s1160_s1, 512  ;;  %p1162_p2 = scmp.lt.s32.totalorder %s1578_s27, %s1160_s1 }
  0xc0   : > { %895 = vmatprep.subr.bf16.mxu0 %v1240_v0  ;;  %vm389_vm1 = vmand %vm371_vm11, %vm385_vm12  ;;  %p1158_p6 = pneg %p1157_p0  ;;  %p1163_p9 = scmp.lt.s32.totalorder %s1161_s20, %s1155_s22 }
  0xc2   : > { %p1164_p10 = por %p1163_p9, %p1162_p2 }
  0xc3   : > { %v1006_v23 = vpop.eup %1005  ;;  %896 = vmatpush3.bf16.msra.mxu0 %v1000_v25 }
  0xc4   : > { %v400_v26 = vsel %vm396_vm7, %v1006_v23, 0.0  ;;  %897 = vmatprep.subr.bf16.mxu0 %v1240_v0  ;;  %p1165_p1 = pnand %p1164_p10, %p1158_p6 }
  0xc5   : > { %v1008_v27 = vpop.eup %1007  ;;  %v407_v28 = vrot.slane %v400_v26, %v362_v10 }
  0xc6   : > { %v401_v29 = vsel %vm397_vm13, %v1008_v27, 0.0 }
  0xc7   : > { %v414_v30 = vsel %vm1561_vm10, %v407_v28, 0.0  ;;  %v415_v31 = vsel %vm387_vm14, %v407_v28, 0.0  ;;  %v411_v32 = vrot.slane %v401_v29, %v362_v10  ;;  %898 = vmatpush3.bf16.msra.mxu0 %v1001_v33 }
  0xc8   : > { %v418_v34 = vpack.c.bf16 %v415_v31, %v414_v30  ;;  %899 = vmatprep.subr.bf16.mxu0 %v1240_v0 }
  0xc9   : > { %v416_v35 = vsel %vm388_vm15, %v411_v32, 0.0  ;;  %v417_v36 = vsel %vm389_vm1, %v411_v32, 0.0 }
  0xca   : > { %424 = vxpose.xlu0.c.b16.start.end [1/1] (short) (narrow) %v418_v34, 16  ;;  %v419_v37 = vpack.c.bf16 %v417_v36, %v416_v35 }
  0xcb   : > { %900 = vmatpush3.bf16.msra.mxu0 %v1002_v41 }
  0xcc   : > { %901 = vmatprep.subr.bf16.mxu0 %v1240_v0 }
  0xce   : > { %490 = vxpose.xlu0.c.b16.start.end [1/1] (short) (narrow) %v419_v37, 16 }
  0xcf   : > { %902 = vmatpush3.bf16.msra.mxu0 %v1003_v42 }
  0xd0   : > { %903 = vmatprep.subr.bf16.mxu0 %v1240_v0 }
  0xd3   : > { %904 = vmatpush3.bf16.msra.mxu0 %v1004_v43 }
 0x130   : > { %v432_v39 = vpop.trf.xlu0 }
 0x131   : > { %880 = vmatmul.mubr.msk.bf16.vlgmr.msra.gmra.mrb[0].mxu1 %vm446_vm2, %v432_v39 }
 0x132   : > { %884 = vmatpush3.bf16.msra.mxu1 %v996_v38  ;;  %885 = vmatprep.mubr.msk.bf16.mxu1 %vm1241_vm0, %v1240_v0 }
 0x134   : > { %v498_v40 = vpop.trf.xlu0 }
 0x139   : > { %886 = vmatmul.mubr.msk.bf16.vlgmr.msra.gmra.mrb[4].mxu1 %vm446_vm2, %v498_v40 }
 0x204   : > { %v484_v44 = vpop.f32.mrb[0].mxu1 }
 0x205   : > { %v881_v45 = vpop.f32.mrb[1].mxu1 }
 0x206   : > { %v487_v46 = vpop.f32.mrb[2].mxu1 }
 0x207   : > { %v882_v47 = vpop.f32.mrb[3].mxu1 }
 0x20c   : > { %v549_v48 = vpop.f32.mrb[4].mxu1 }
 0x20d   : > { %v555_v49 = vpack.c.bf16 %v549_v48, %v484_v44  ;;  %v887_v50 = vpop.f32.mrb[5].mxu1 }
 0x20e   : > { %v552_v51 = vpop.f32.mrb[6].mxu1 }
 0x20f   : > { %v888_v52 = vpop.f32.mrb[7].mxu1  ;;  %906 = vmatmul.mubr.bf16.vlgmr.msra.gmra.mrb[0].mxu0 %v555_v49 }
 0x2e2   : > { %v661_v54 = vpop.f32.mrb[0].mxu0 }
 0x2e3   : > { %v662_v55 = vadd.f32 %v845_v53, %v661_v54  ;;  %v907_v56 = vpop.f32.mrb[1].mxu0 }
 0x2e4   : > { %v664_v57 = vpop.f32.mrb[2].mxu0 }
 0x2e5   : > { %668 = vst [vmem:[%s347_s29] sm:$0xff] %v662_v55  ;;  %v665_v58 = vadd.f32 %v845_v53, %v664_v57  ;;  %v908_v59 = vpop.f32.mrb[3].mxu0 }
 0x2e7   : > { %669 = vst [vmem:[%s347_s29 + $0x8] sm:$0xff] %v665_v58 }
 0x2e8   : > { %1168 = shalt.err (!%p1165_p1)
}
 0x2e9   : > { %s1169_s16 = scalar_lea.hbm %s1583_s11, 256  ;;  %s1173_s15 = scalar_lea.hbm %s1632_s5, 512 }
 0x2ea   : > { %p1170_p5 = scmp.ne.s32.totalorder %s1583_s11, %s1169_s16  ;;  %p1174_p4 = scmp.lt.u32.totalorder %s1583_s11, %s1632_s5 }
 0x2eb   : > { %p1175_p8 = scmp.lt.u32.totalorder %s1173_s15, %s1169_s16  ;;  %p1177_p3 = scmp.lt.u32.totalorder %s1169_s16, %s1583_s11 }
 0x2ec   : > { %p1171_p11 = pnand %p1170_p5, %p1680_p7 }
 0x2ed   : > { %p1176_p13 = por %p1175_p8, %p1174_p4 }
 0x2ee   : > { %p1172_p12 = pneg %p1171_p11 }
 0x2ef   : > { %p1178_p0 = por %p1177_p3, %p1176_p13 }
 0x2f1   : > { %p1179_p6 = pnand %p1178_p0, %p1172_p12 }
 0x2f3   : > { %1182 = shalt.err (!%p1179_p6)
}
 0x2f4   : > { %s1243_s7 = smov 128   ;;  %s1244_s9 = smov 8  }
 0x2f5   : > { %923 = dma.vmem_to_hbm [thread:$0]  (%p1680_p7), %s1578_s27, 256, %s1583_s11, %s671_s12, %s1243_s7, %s1243_s7, %s1244_s9  }
 0x2f6 PF: > { %s699_s10 = sand.u32 1, %s1217_s18   ;;  %p1681_p2 = scmp.ne.s32.totalorder %s1655_s6, 0 }
 0x2f7   : > { %p1682_p9 = scmp.ge.s32.totalorder %s1229_s21, 2  ;;  %s700_s29 = scalar_lea.sflag [#allocation4], %s699_s10 }
 0x2f9   : > { %p943_p10 = pnand %p1682_p9, %p1681_p2 }
 0x2fb   : > { %1212 = dma.done.wait (!%p943_p10), %s700_s29, 256  }
 0x2fc   : > { %1214 = vsyncadd (!%p943_p10), %s700_s29, 4294967040  ;;  %s1683_s26 = sld [smem:[#allocation16_spill]]  ;;  %s1684_s20 = sld [smem:[#allocation17_spill]] }
 0x2fd   : > { %p22_p1 = scmp.ge.s32.totalorder %s1300_s24, 4   ;;  %s1685_s18 = smov %s1221_s19 }
 0x2fe   : > { %s1687_s21 = smov %s1300_s24 }
 0x2ff   :  { %24 = sbr.rel (!%p22_p1) target bundleno = 11 (0xb), region = 117 }
 0x302   : > { %s1686_s19 = smov %s1683_s26 }
 0x306   :  { %705 = vsyncpa [#allocation3], 1 }
 0x307   :  { %707 = vsyncpa [#allocation3 + $0x1], 1 }
 0x308   :  { %708 = vsyncpa [#allocation6], 1 }
 0x309   :  { %710 = vsyncpa [#allocation6 + $0x1], 1 }
 0x30a   :  { %711 = vsyncpa [#allocation9], 1 }
 0x30b   :  { %712 = vsyncpa [#allocation4], 1 }
 0x30c   :  { %714 = vsyncpa [#allocation4 + $0x1], 1 }

</bundles_post_ra>
